<compile_context>
chip_gen: v5e
topology: v5e:2x2
jax: 0.10.0
libtpu: 0.0.40
codegen_flags: <defaults>
</compile_context>

<pallas_src>
import jax
import jax.numpy as jnp
from jax.experimental import pallas as pl
from jax.experimental.pallas import tpu as pltpu


def _round_up(v, m):
    return ((v + m - 1) // m) * m


def _pad2(a, shape):
    return jnp.pad(a, [(0, t - s) for s, t in zip(a.shape, shape)])


# ---------------------------------------------------------------------------
# Kernel
# ---------------------------------------------------------------------------
def tdgnn_kernel(x_ref, w1_ref, b1_ref, w2_ref, b2_ref, m_ref, out_ref):
    """One node-row tile per grid step (grid = (core_split, node_tiles)).

    x_ref  : [tile_n, F8]     bf16   node-feature tile (F unpadded to lanes)
    w1_ref : [F8, H_pad]      bf16
    b1_ref : [1, H_pad]       f32
    w2_ref : [H_pad, F_pad]   bf16
    b2_ref : [1, F_pad]       f32
    m_ref  : [G_pad, tile_n]  f32    node-column tile of (P + P @ sum_l A[l])
    out_ref: [G_pad, F_pad]   f32    per-core pooled partial (resident output)
    """
    i = pl.program_id(1)

    @pl.when(i == 0)
    def _init():
        out_ref[...] = jnp.zeros_like(out_ref)

    # lin1 + relu -> [tile_n, H_pad]   (bf16 MXU inputs, f32 accumulate, K=F)
    h = jnp.dot(x_ref[...], w1_ref[...],
                preferred_element_type=jnp.float32) + b1_ref[...]
    h = jnp.maximum(h, 0.0)

    # lin2 -> [tile_n, F_pad]
    x2 = jnp.dot(h.astype(jnp.bfloat16), w2_ref[...],
                 preferred_element_type=jnp.float32) + b2_ref[...]

    # Folded prop_sum + global_add_pool partial sum (f32 pooling matmul):
    #   out[g, f] += sum_n M[g, n] * x2[n, f]
    out_ref[...] += jnp.dot(m_ref[...], x2, preferred_element_type=jnp.float32)


# ---------------------------------------------------------------------------
# Wrapper
# ---------------------------------------------------------------------------
def tdgnn_forward(x, w1, b1, w2, b2, adj, pool, *, tile_n=512, core_split=2):
    """Fused TDGNN forward.  Returns (log_probs [G, F], 0)."""
    N, F = x.shape
    H = w1.shape[1]
    G = pool.shape[0]

    # Fold hop-summed adjacency into the pooling matrix (exact algebra: every
    # hop multiplies the same x2).  The kernel never sees an [N, N] operand.
    # TODO(synk): for genuinely large sparse graphs, build M from edge lists
    # (segment-sum / scalar-prefetch gather) instead of densifying [N, N].
    adj_sum = jnp.sum(adj, axis=0)                 # [N, N]
    m_fold = pool + pool @ adj_sum                 # [G, N], f32

    # Padded shapes.
    f_in = _round_up(F, 8)        # x feature dim: NOT lane-padded (HBM-bound)
    h_pad = _round_up(H, 128)
    f_pad = _round_up(F, 128)     # lane-dense lin2 output / pooled accumulator
    g_pad = _round_up(G, 8)

    # Node tiling: tile_n multiple of 128 (lane-dense M tile); don't pad N
    # beyond the next 128-multiple just to fill a big tile.
    tile_n = max(128, min(tile_n, _round_up(N, 128)))
    n_pad = _round_up(N, core_split * tile_n)
    steps = n_pad // (core_split * tile_n)

    xp = _pad2(x, (n_pad, f_in)).astype(jnp.bfloat16)          # [n_pad, F8]
    w1p = _pad2(w1, (f_in, h_pad)).astype(jnp.bfloat16)
    w2p = _pad2(w2, (h_pad, f_pad)).astype(jnp.bfloat16)
    b1p = _pad2(b1, (1, h_pad))                                # f32
    b2p = _pad2(b2, (1, f_pad))                                # f32
    # f32 pooling matrix.  Padded node COLUMNS must stay zero: they cancel the
    # nonzero x2 rows produced by zero-padded x rows (= relu(b1)@W2 + b2).
    mp = _pad2(m_fold, (g_pad, n_pad))                         # [G_pad, n_pad]

    flops = (2 * n_pad * f_in * h_pad          # lin1
             + 2 * n_pad * h_pad * f_pad       # lin2
             + 2 * n_pad * g_pad * f_pad)      # folded prop + pool
    bytes_accessed = ((xp.size + w1p.size + w2p.size) * 2
                      + (b1p.size + b2p.size + mp.size
                         + core_split * g_pad * f_pad) * 4)

    partial = pl.pallas_call(
        tdgnn_kernel,
        out_shape=jax.ShapeDtypeStruct((core_split, g_pad, f_pad), jnp.float32),
        grid_spec=pltpu.PrefetchScalarGridSpec(
            num_scalar_prefetch=0,
            grid=(core_split, steps),
            in_specs=[
                # x node tile: full-extent (unpadded) feature last dim.
                pl.BlockSpec((tile_n, f_in), lambda c, i: (c * steps + i, 0)),
                # Weights/biases: constant block index -> fetched once, resident.
                pl.BlockSpec((f_in, h_pad), lambda c, i: (0, 0)),
                pl.BlockSpec((1, h_pad), lambda c, i: (0, 0)),
                pl.BlockSpec((h_pad, f_pad), lambda c, i: (0, 0)),
                pl.BlockSpec((1, f_pad), lambda c, i: (0, 0)),
                # M streamed untransposed: lane-dense [G_pad, tile_n] tile.
                pl.BlockSpec((g_pad, tile_n), lambda c, i: (0, c * steps + i)),
            ],
            # Each core owns one output row-block; constant across the node
            # axis -> resident accumulator (no separate scratch needed).
            out_specs=pl.BlockSpec((None, g_pad, f_pad), lambda c, i: (c, 0, 0)),
        ),
        compiler_params=pltpu.CompilerParams(
            # Core axis is embarrassingly parallel (megacore split on v7x);
            # the node-tile axis carries the resident-output reduction.
            dimension_semantics=("parallel", "arbitrary"),
        ),
        cost_estimate=pl.CostEstimate(
            flops=int(flops),
            transcendentals=0,
            bytes_accessed=int(bytes_accessed),
        ),
    )(xp, w1p, b1p, w2p, b2p, mp)

    # Tiny epilogue in plain XLA: sum per-core partials, drop padding,
    # log_softmax over the real feature columns.
    pooled = jnp.sum(partial, axis=0)[:G, :F]
    return jax.nn.log_softmax(pooled, axis=1), 0


# ---------------------------------------------------------------------------
# Graph prep glue (wrapper-side XLA; densify + fold).
# ---------------------------------------------------------------------------
def build_dense_adjacency(edge_index, edge_weight, num_nodes):
    """edge_index: [L, 2, E] (row0=src, row1=dst), edge_weight: [L, E].
    Returns dense A: [L, N, N] with A[l, dst, src] += w  (aggr='add')."""
    L = edge_index.shape[0]
    adj = jnp.zeros((L, num_nodes, num_nodes), jnp.float32)
    for l in range(L):
        src = edge_index[l, 0]
        dst = edge_index[l, 1]
        adj = adj.at[l, dst, src].add(edge_weight[l])
    return adj


def build_pool_matrix(batch, num_graphs):
    """batch: [N] graph id per node -> P: [G, N], P[g, n] = 1 iff batch[n]==g."""
    g_ids = jnp.arange(num_graphs)[:, None]
    return (batch[None, :] == g_ids).astype(jnp.float32)


# ---------------------------------------------------------------------------
# References
# ---------------------------------------------------------------------------
def _mlp_f32(x, w1, b1, w2, b2):
    h = jnp.maximum(x @ w1 + b1, 0.0)
    return h @ w2 + b2


def reference_unfolded_f32(x, w1, b1, w2, b2, adj, pool):
    """Original module structure (per-hop matmuls, then pool), pure f32."""
    x2 = _mlp_f32(x, w1, b1, w2, b2)
    acc = x2
    for l in range(adj.shape[0]):
        acc = acc + adj[l] @ x2
    return jax.nn.log_softmax(pool @ acc, axis=1)


def reference_folded_f32(x, w1, b1, w2, b2, adj, pool):
    """Folded structure (M = P + P@adj_sum), pure f32 — validates the fold."""
    x2 = _mlp_f32(x, w1, b1, w2, b2)
    m_fold = pool + pool @ jnp.sum(adj, axis=0)
    return jax.nn.log_softmax(m_fold @ x2, axis=1)


def reference_precision_matched(x, w1, b1, w2, b2, adj, pool):
    """bf16 MXU operands for lin1/lin2, f32 accumulation, f32 pooling."""
    bf = jnp.bfloat16
    h = jnp.dot(x.astype(bf), w1.astype(bf),
                preferred_element_type=jnp.float32) + b1
    h = jnp.maximum(h, 0.0)
    x2 = jnp.dot(h.astype(bf), w2.astype(bf),
                 preferred_element_type=jnp.float32) + b2
    m_fold = pool + pool @ jnp.sum(adj, axis=0)
    pooled = m_fold @ x2
    return jax.nn.log_softmax(pooled, axis=1)


# ---------------------------------------------------------------------------
if __name__ == "__main__":
    # Small synthetic shapes consistent with the module.
    N = 32          # nodes
    F = 8           # dataset.num_features
    H = 32          # args.hidden_units
    G = 2           # graphs in the batch
    E = 48          # edges per hop
    layers = [1, 2]  # args.layers -> L = 2 hops
    L = len(layers)

    key = jax.random.PRNGKey(0)
    keys = jax.random.split(key, 12)

    x = jax.random.normal(keys[0], (N, F), jnp.float32)

    # PyTorch Linear computes x @ W.T + b — weights stored here as [in, out].
    w1 = jax.random.normal(keys[1], (F, H), jnp.float32) * 0.2
    b1 = jax.random.normal(keys[2], (1, H), jnp.float32) * 0.1
    w2 = jax.random.normal(keys[3], (H, F), jnp.float32) * 0.2
    b2 = jax.random.normal(keys[4], (1, F), jnp.float32) * 0.1
    # (lin3 params exist in the module but its output is discarded by forward.)

    src = jax.random.randint(keys[7], (L, E), 0, N)
    dst = jax.random.randint(keys[8], (L, E), 0, N)
    edge_index = jnp.stack([src, dst], axis=1)                      # [L, 2, E]
    edge_weight = jax.random.uniform(keys[9], (L, E), jnp.float32)  # [L, E]

    batch = jnp.sort(jax.random.randint(keys[10], (N,), 0, G))

    adj = build_dense_adjacency(edge_index, edge_weight, N)   # [L, N, N]
    pool = build_pool_matrix(batch, G)                        # [G, N]

    logp, zero = tdgnn_forward(x, w1, b1, w2, b2, adj, pool)
    logp = jax.block_until_ready(logp)
    assert logp.shape == (G, F)
    assert zero == 0

    # (a) wrapper-side fold is exact algebra (pure-f32 folded vs unfolded).
    ref_unfolded = reference_unfolded_f32(x, w1, b1, w2, b2, adj, pool)
    ref_folded = reference_folded_f32(x, w1, b1, w2, b2, adj, pool)
    assert jnp.allclose(ref_folded, ref_unfolded, atol=1e-4, rtol=1e-4), \
        "fold mismatch"

    # (b) kernel matches the precision-matched reference.
    ref_pm = reference_precision_matched(x, w1, b1, w2, b2, adj, pool)
    assert jnp.allclose(logp, ref_pm, atol=2e-3, rtol=2e-3), \
        "kernel mismatch vs reference"

    print("KERNEL_OK")
</pallas_src>

<mosaic_0001>
module attributes {stable_mosaic.version = 11 : i64} {
  func.func @tdgnn_kernel(%arg0: i32, %arg1: i32, %arg2: memref<128x8xbf16, #tpu.memory_space<vmem>>, %arg3: memref<8x128xbf16, #tpu.memory_space<vmem>>, %arg4: memref<1x128xf32, #tpu.memory_space<vmem>>, %arg5: memref<128x128xbf16, #tpu.memory_space<vmem>>, %arg6: memref<1x128xf32, #tpu.memory_space<vmem>>, %arg7: memref<8x128xf32, #tpu.memory_space<vmem>>, %arg8: memref<1x8x128xf32, #tpu.memory_space<vmem>>) attributes {dimension_semantics = [#tpu.dimension_semantics<parallel>, #tpu.dimension_semantics<arbitrary>], iteration_bounds = array<i64: 2, 1>, scalar_prefetch = 0 : i64, scratch_operands = 0 : i64, tpu.core_type = #tpu.core_type<tc>, window_params = [{transform_indices = @transform_0, window_bounds = array<i64: 128, 8>}, {pipeline_mode = #tpu.pipeline_mode<synchronous>, transform_indices = @transform_1, window_bounds = array<i64: 8, 128>}, {pipeline_mode = #tpu.pipeline_mode<synchronous>, transform_indices = @transform_2, window_bounds = array<i64: 1, 128>}, {pipeline_mode = #tpu.pipeline_mode<synchronous>, transform_indices = @transform_3, window_bounds = array<i64: 128, 128>}, {pipeline_mode = #tpu.pipeline_mode<synchronous>, transform_indices = @transform_4, window_bounds = array<i64: 1, 128>}, {transform_indices = @transform_5, window_bounds = array<i64: 8, 128>}, {transform_indices = @transform_6, window_bounds = array<i64: 1, 8, 128>}]} {
    %c0_i32 = arith.constant 0 : i32
    %0 = arith.cmpi eq, %arg1, %c0_i32 : i32
    %1 = arith.extui %0 : i1 to i32
    %c0_i32_0 = arith.constant 0 : i32
    %2 = arith.cmpi ne, %1, %c0_i32_0 : i32
    scf.if %2 {
      %cst_21 = arith.constant 0.000000e+00 : f32
      %25 = vector.broadcast %cst_21 : f32 to vector<8x128xf32>
      %c0_22 = arith.constant 0 : index
      %c0_23 = arith.constant 0 : index
      %c0_24 = arith.constant 0 : index
      %26 = vector.load %arg8[%c0_22, %c0_23, %c0_24] : memref<1x8x128xf32, #tpu.memory_space<vmem>>, vector<1x8x128xf32>
      %27 = vector.shape_cast %26 : vector<1x8x128xf32> to vector<8x128xf32>
      %28 = vector.shape_cast %25 : vector<8x128xf32> to vector<1x8x128xf32>
      tpu.vector_store %arg8[%c0_22, %c0_23, %c0_24], %28 {strides = array<i32>} : memref<1x8x128xf32, #tpu.memory_space<vmem>>, vector<1x8x128xf32>,
    } else {
    }
    %c0 = arith.constant 0 : index
    %c0_1 = arith.constant 0 : index
    %3 = vector.load %arg2[%c0, %c0_1] : memref<128x8xbf16, #tpu.memory_space<vmem>>, vector<128x8xbf16>
    %c0_2 = arith.constant 0 : index
    %c0_3 = arith.constant 0 : index
    %4 = vector.load %arg3[%c0_2, %c0_3] : memref<8x128xbf16, #tpu.memory_space<vmem>>, vector<8x128xbf16>
    %cst = arith.constant dense<0.000000e+00> : vector<128x128xf32>
    %5 = tpu.matmul %3, %4, %cst {dimension_numbers = #tpu.dot_dimension_numbers<[1], [0], [0], [1], [0, 0, 1, 1], [], []>} : vector<128x8xbf16>, vector<8x128xbf16>, vector<128x128xf32> -> vector<128x128xf32>
    %c0_4 = arith.constant 0 : index
    %c0_5 = arith.constant 0 : index
    %6 = vector.load %arg4[%c0_4, %c0_5] : memref<1x128xf32, #tpu.memory_space<vmem>>, vector<1x128xf32>
    %7 = vector.broadcast %6 : vector<1x128xf32> to vector<128x128xf32>
    %8 = arith.addf %5, %7 : vector<128x128xf32>
    %cst_6 = arith.constant 0.000000e+00 : f32
    %9 = vector.broadcast %cst_6 : f32 to vector<128x128xf32>
    %10 = arith.maximumf %8, %9 : vector<128x128xf32>
    %11 = arith.truncf %10 : vector<128x128xf32> to vector<128x128xbf16>
    %c0_7 = arith.constant 0 : index
    %c0_8 = arith.constant 0 : index
    %12 = vector.load %arg5[%c0_7, %c0_8] : memref<128x128xbf16, #tpu.memory_space<vmem>>, vector<128x128xbf16>
    %cst_9 = arith.constant dense<0.000000e+00> : vector<128x128xf32>
    %13 = tpu.matmul %11, %12, %cst_9 {dimension_numbers = #tpu.dot_dimension_numbers<[1], [0], [0], [1], [0, 0, 1, 1], [], []>} : vector<128x128xbf16>, vector<128x128xbf16>, vector<128x128xf32> -> vector<128x128xf32>
    %c0_10 = arith.constant 0 : index
    %c0_11 = arith.constant 0 : index
    %14 = vector.load %arg6[%c0_10, %c0_11] : memref<1x128xf32, #tpu.memory_space<vmem>>, vector<1x128xf32>
    %15 = vector.broadcast %14 : vector<1x128xf32> to vector<128x128xf32>
    %16 = arith.addf %13, %15 : vector<128x128xf32>
    %c0_12 = arith.constant 0 : index
    %c0_13 = arith.constant 0 : index
    %c0_14 = arith.constant 0 : index
    %17 = vector.load %arg8[%c0_12, %c0_13, %c0_14] : memref<1x8x128xf32, #tpu.memory_space<vmem>>, vector<1x8x128xf32>
    %18 = vector.shape_cast %17 : vector<1x8x128xf32> to vector<8x128xf32>
    %c0_15 = arith.constant 0 : index
    %c0_16 = arith.constant 0 : index
    %19 = vector.load %arg7[%c0_15, %c0_16] : memref<8x128xf32, #tpu.memory_space<vmem>>, vector<8x128xf32>
    %cst_17 = arith.constant dense<0.000000e+00> : vector<8x128xf32>
    %20 = tpu.matmul %19, %16, %cst_17 {dimension_numbers = #tpu.dot_dimension_numbers<[1], [0], [0], [1], [0, 0, 1, 1], [], []>} : vector<8x128xf32>, vector<128x128xf32>, vector<8x128xf32> -> vector<8x128xf32>
    %21 = arith.addf %18, %20 : vector<8x128xf32>
    %c0_18 = arith.constant 0 : index
    %c0_19 = arith.constant 0 : index
    %c0_20 = arith.constant 0 : index
    %22 = vector.load %arg8[%c0_18, %c0_19, %c0_20] : memref<1x8x128xf32, #tpu.memory_space<vmem>>, vector<1x8x128xf32>
    %23 = vector.shape_cast %22 : vector<1x8x128xf32> to vector<8x128xf32>
    %24 = vector.shape_cast %21 : vector<8x128xf32> to vector<1x8x128xf32>
    tpu.vector_store %arg8[%c0_18, %c0_19, %c0_20], %24 {strides = array<i32>} : memref<1x8x128xf32, #tpu.memory_space<vmem>>, vector<1x8x128xf32>,
    return
  }
  func.func @transform_0(%arg0: i32, %arg1: i32) -> (i32, i32) {
    %c1_i32 = arith.constant 1 : i32
    %0 = arith.muli %arg0, %c1_i32 : i32
    %1 = arith.addi %0, %arg1 : i32
    %c0_i32 = arith.constant 0 : i32
    %c0_i32_0 = arith.constant 0 : i32
    return %1, %c0_i32 : i32, i32
  }
  func.func @transform_1(%arg0: i32, %arg1: i32) -> (i32, i32) {
    %c0_i32 = arith.constant 0 : i32
    %c0_i32_0 = arith.constant 0 : i32
    %c0_i32_1 = arith.constant 0 : i32
    return %c0_i32, %c0_i32_0 : i32, i32
  }
  func.func @transform_2(%arg0: i32, %arg1: i32) -> (i32, i32) {
    %c0_i32 = arith.constant 0 : i32
    %c0_i32_0 = arith.constant 0 : i32
    %c0_i32_1 = arith.constant 0 : i32
    return %c0_i32, %c0_i32_0 : i32, i32
  }
  func.func @transform_3(%arg0: i32, %arg1: i32) -> (i32, i32) {
    %c0_i32 = arith.constant 0 : i32
    %c0_i32_0 = arith.constant 0 : i32
    %c0_i32_1 = arith.constant 0 : i32
    return %c0_i32, %c0_i32_0 : i32, i32
  }
  func.func @transform_4(%arg0: i32, %arg1: i32) -> (i32, i32) {
    %c0_i32 = arith.constant 0 : i32
    %c0_i32_0 = arith.constant 0 : i32
    %c0_i32_1 = arith.constant 0 : i32
    return %c0_i32, %c0_i32_0 : i32, i32
  }
  func.func @transform_5(%arg0: i32, %arg1: i32) -> (i32, i32) {
    %c1_i32 = arith.constant 1 : i32
    %0 = arith.muli %arg0, %c1_i32 : i32
    %1 = arith.addi %0, %arg1 : i32
    %c0_i32 = arith.constant 0 : i32
    %c0_i32_0 = arith.constant 0 : i32
    return %c0_i32, %1 : i32, i32
  }
  func.func @transform_6(%arg0: i32, %arg1: i32) -> (i32, i32, i32) {
    %c0_i32 = arith.constant 0 : i32
    %c0_i32_0 = arith.constant 0 : i32
    %c0_i32_1 = arith.constant 0 : i32
    return %arg0, %c0_i32, %c0_i32_0 : i32, i32, i32
  }
}

</mosaic_0001>

<bundles_post_ra>
// kernel: tpu_custom_call.1
= control target key start
LH: loop header
LB: loop body
LE: loop exit
PB: predicated region body
PF: predicated region fallthrough
CT: control target
= control target key end

     0   :  { %11 = vsyncpa [#allocation3], 0  ;;  %s1125_s0 = inlined_call_operand.vmem [shape: bf16[256,8], index: 0, kind: input, shape index: {}]   ;;  %s1126_s1 = inlined_call_operand.vmem [shape: bf16[8,128], index: 1, kind: input, shape index: {}]   ;;  %s1127_s2 = inlined_call_operand.vmem [shape: f32[1,128], index: 2, kind: input, shape index: {}]   ;;  %s1128_s3 = inlined_call_operand.vmem [shape: bf16[128,128], index: 3, kind: input, shape index: {}]   ;;  %s1129_s4 = inlined_call_operand.vmem [shape: f32[1,128], index: 4, kind: input, shape index: {}]   ;;  %s1130_s5 = inlined_call_operand.vmem [shape: f32[8,256], index: 5, kind: input, shape index: {}]   ;;  %s1131_s6 = inlined_call_operand.hbm [shape: f32[2,8,128], index: 6, kind: output, shape index: {}]  }
   0x1   :  { %13 = vsyncpa [#allocation3 + $0x1], 0  ;;  %s983_s21 = smov 0   ;;  %s985_s22 = smov 0  }
   0x2   :  { %s987_s23 = smov 0   ;;  %s989_s24 = smov 0  }
   0x3   :  { %s991_s25 = smov 0   ;;  %s993_s26 = smov 0  }
   0x4 LB: > { %s700_s27 = sadd.s32 4294967295, %s946_s26   ;;  %s701_s28 = sadd.s32 4294967294, %s946_s26   ;;  %s946_s26 = sphi %s993_s26, %s19_s26   ;;  %s942_s25 = sphi %s991_s25, %s1138_s25   ;;  %s938_s24 = sphi %s989_s24, %s1137_s24   ;;  %s934_s23 = sphi %s987_s23, %s1136_s23   ;;  %s930_s22 = sphi %s985_s22, %s1135_s22   ;;  %s926_s21 = sphi %s983_s21, %s1134_s21  }
   0x5   : > { %s31_s29 = sadd.s32 1, %s942_s25  ;;  %s178_s30 = sadd.s32 1, %s934_s23 }
   0x6   : > { %p33_p0 = scmp.ge.s32.totalorder %s31_s29, 2  ;;  %p188_p1 = scmp.ne.s32.totalorder %s934_s23, %s930_s22 }
   0x7   : > { %p189_p2 = scmp.eq.s32.totalorder %s700_s27, 1  ;;  %p194_p3 = scmp.ne.s32.totalorder %s930_s22, %s926_s21 }
   0x8   : > { %s1140_s29 = smov (%p33_p0, %s31_s29), 0  ;;  %p195_p5 = scmp.eq.s32.totalorder %s701_s28, 1 }
   0x9   : > { %p1023_p4 = por %p189_p2, %p188_p1  ;;  %s175_s8 = ssub.s32 %s942_s25, %s1140_s29 }
   0xa   : > { %p704_p6 = scmp.ge.s32.totalorder %s946_s26, 1  ;;  %p176_p7 = scmp.eq.s32.totalorder %s175_s8, 0 }
   0xb   : > { %p1030_p8 = por %p195_p5, %p194_p3  ;;  %p245_p9 = scmp.lt.s32.totalorder %s946_s26, 3 }
   0xc   : > { %s1036_s10 = scalar_select %p176_p7, %s934_s23, %s178_s30  }
   0xd   : > { %p246_p10 = pnand %p704_p6, %p245_p9 }
   0xe   : > { %s706_s13 = sshll.u32 (!%p246_p10), %s938_s24, 4  ;;  %p290_p12 = scmp.lt.s32.totalorder (!%p246_p10), %s938_s24, 1 }
   0xf   : > { %249 = sbr.rel (%p246_p10) target bundleno = 585 (0x249), region = 44  ;;  %p283_p11 = scmp.lt.s32.totalorder (!%p246_p10), %s706_s13, 31 }
  0x10   : > { %s278_s15 = sand.u32 (!%p246_p10), 1, %s930_s22   ;;  %s782_s18 = sshll.u32 (!%p246_p10), %s938_s24, 3 }
  0x11   : > { %s705_s16 = sshll.u32 (!%p246_p10), %s278_s15, 3  ;;  %s616_s20 = scalar_lea.hbm (!%p246_p10), %s1131_s6, %s782_s18 }
  0x12   : > { %s280_s27 = scalar_lea.vmem (!%p246_p10), [#allocation2], %s705_s16  ;;  %s620_s30 = sshll.u32 (!%p246_p10), %s616_s20, 4  ;;  %s621_s30 = int_to_ptr.hbm [resolvable:$true] %s620_s30 }
  0x13   : > { %s618_s28 = sshll.u32 (!%p246_p10), %s280_s27, 4  ;;  %s619_s28 = int_to_ptr.vmem [resolvable:$true] %s618_s28 }
  0x14   : > { %v317_v0 = vld [vmem:[%s1126_s1] sm:$0xf]  ;;  %vm387_vm0 = vcmask 1043456   ;;  %s1142_s13 = smov (!%p283_p11, %s706_s13), 31  ;;  %vm362_vm1 = vcmask 64512   ;;  %v800_v6 = vld [vmem:[%s1128_s3 + $0x38] sm:$0xff] }
  0x15   : > { %v389_v1 = vsel %vm387_vm0, %v317_v0, 0  ;;  %s707_s14 = sshll.u32 %s1142_s13, 2  ;;  %532 = vmatpush.bf16.msra.mxu1 %v800_v6  ;;  %v799_v7 = vld [vmem:[%s1128_s3 + $0x30] sm:$0xff]  ;;  %802 = vmatpush.bf16.msra.mxu3 %v800_v6  ;;  %v798_v8 = vld [vmem:[%s1128_s3 + $0x28] sm:$0xff]  ;;  %v797_v10 = vld [vmem:[%s1128_s3 + $0x20] sm:$0xff] }
  0x16   : > { %398 = vmatpush.bf16.msra.mxu0 %v389_v1  ;;  %801 = vmatpush.bf16.msra.mxu2 %v389_v1  ;;  %s286_s17 = scalar_lea.vmem %s1125_s0, %s707_s14  ;;  %v796_v14 = vld [vmem:[%s1128_s3 + $0x18] sm:$0xff]  ;;  %v795_v15 = vld [vmem:[%s1128_s3 + $0x10] sm:$0xff]  ;;  %v794_v16 = vld [vmem:[%s1128_s3 + $0x8] sm:$0xff] }
  0x17   : > { %v785_v2 = vld [vmem:[%s286_s17] sm:$0xff]  ;;  %v786_v3 = vld [vmem:[%s286_s17 + $0x8] sm:$0xff]  ;;  %v787_v4 = vld [vmem:[%s286_s17 + $0x10] sm:$0xff]  ;;  %s291_s8 = scalar_select %p290_p12, %s938_s24, 1 }
  0x18   : > { %v790_v5 = vld [vmem:[%s286_s17 + $0x28] sm:$0xff]  ;;  %v788_v9 = vld [vmem:[%s286_s17 + $0x18] sm:$0xff]  ;;  %v791_v11 = vld [vmem:[%s286_s17 + $0x30] sm:$0xff] }
  0x19   : > { %741 = vmatmul.msk.bf16.vlgmr.msra.gmra.mxu0 %vm362_vm1, %v785_v2  ;;  %746 = vmatmul.msk.bf16.vlgmr.msra.gmra.mxu2 %vm362_vm1, %v790_v5  ;;  %v789_v12 = vld [vmem:[%s286_s17 + $0x20] sm:$0xff]  ;;  %v792_v13 = vld [vmem:[%s286_s17 + $0x38] sm:$0xff]  ;;  %s708_s11 = sshll.u32 %s291_s8, 3  ;;  %s606_s8 = scalar_lea.sflag [#allocation3], %s278_s15 }
  0x1a   : > { %533 = vmatpush.bf16.msra.mxu1 %v799_v7  ;;  %803 = vmatpush.bf16.msra.mxu3 %v799_v7  ;;  %v793_v17 = vld [vmem:[%s1128_s3] sm:$0xff]  ;;  %s293_s14 = scalar_lea.vmem %s1130_s5, %s708_s11  ;;  %s882_s11 = sshra.s32 %s621_s30, 4  ;;  %s883_s11 = int_to_ptr.hbm [resolvable:$true] %s882_s11 }
  0x1b   : > { %v866_v19 = vld [vmem:[%s1127_s2] ss:$0 sm:$0xff]  ;;  %s884_s12 = scalar_lea.hbm %s883_s11, 8  ;;  %p889_p2 = scmp.lt.s32.totalorder %s883_s11, %s1131_s6 }
  0x1c   : > { %p885_p13 = scmp.ne.s32.totalorder %s883_s11, %s884_s12 }
  0x1e   : > { %534 = vmatpush.bf16.msra.mxu1 %v798_v8  ;;  %804 = vmatpush.bf16.msra.mxu3 %v798_v8  ;;  %p886_p0 = pnand %p885_p13, %p1023_p4 }
  0x20   : > { %p887_p1 = pneg %p886_p0 }
  0x22   : > { %535 = vmatpush.bf16.msra.mxu1 %v797_v10  ;;  %805 = vmatpush.bf16.msra.mxu3 %v797_v10 }
  0x26   : > { %536 = vmatpush.bf16.msra.mxu1 %v796_v14  ;;  %806 = vmatpush.bf16.msra.mxu3 %v796_v14 }
  0x29   : > { %742 = vmatmul.msk.bf16.gmra.mxu0 %vm362_vm1, %v786_v3  ;;  %747 = vmatmul.msk.bf16.gmra.mxu2 %vm362_vm1, %v791_v11 }
  0x2a   : > { %537 = vmatpush.bf16.msra.mxu1 %v795_v15  ;;  %807 = vmatpush.bf16.msra.mxu3 %v795_v15 }
  0x2e   : > { %538 = vmatpush.bf16.msra.mxu1 %v794_v16  ;;  %808 = vmatpush.bf16.msra.mxu3 %v794_v16 }
  0x32   : > { %539 = vmatpush.bf16.msra.mxu1 %v793_v17  ;;  %809 = vmatpush.bf16.msra.mxu3 %v793_v17 }
  0x39   : > { %743 = vmatmul.msk.bf16.gmra.mxu0 %vm362_vm1, %v787_v4  ;;  %748 = vmatmul.msk.bf16.gmra.mxu2 %vm362_vm1, %v792_v13 }
  0x49   : > { %744 = vmatmul.msk.bf16.gmra.mxu0 %vm362_vm1, %v788_v9 }
  0x59   : > { %745 = vmatmul.msk.bf16.gmra.mxu0 %vm362_vm1, %v789_v12 }
  0x96   : > { %v400_v18 = vpop.f32.mrf.mxu0 }
  0x97   : > { %v401_v20 = vadd.f32 %v866_v19, %v400_v18 }
  0x99   : > { %v440_v23 = vmax.f32 %v401_v20, 0.0 }
  0x9c   : > { %v425_v48 = vpop.f32.mrf.mxu2 }
  0x9d   : > { %v426_v57 = vadd.f32 %v866_v19, %v425_v48 }
  0x9e   : > { %v402_v21 = vpop.f32.mrf.mxu0 }
  0x9f   : > { %v403_v22 = vadd.f32 %v866_v19, %v402_v21  ;;  %v450_v59 = vmax.f32 %v426_v57, 0.0 }
  0xa1   : > { %v441_v24 = vmax.f32 %v403_v22, 0.0 }
  0xa3   : > { %v456_v25 = vpack.c.bf16 %v441_v24, %v440_v23 }
  0xa4   : > { %v427_v52 = vpop.f32.mrf.mxu2 }
  0xa5   : > { %540 = vmatmul.bf16.vlgmr.msra.gmra.mxu1 %v456_v25  ;;  %v428_v58 = vadd.f32 %v866_v19, %v427_v52 }
  0xa6   : > { %v405_v26 = vpop.f32.mrf.mxu0 }
  0xa7   : > { %v406_v27 = vadd.f32 %v866_v19, %v405_v26  ;;  %v451_v60 = vmax.f32 %v428_v58, 0.0 }
  0xa9   : > { %v442_v30 = vmax.f32 %v406_v27, 0.0  ;;  %v461_v61 = vpack.c.bf16 %v451_v60, %v450_v59 }
  0xac   : > { %v430_v56 = vpop.f32.mrf.mxu2 }
  0xad   : > { %v431_v63 = vadd.f32 %v866_v19, %v430_v56 }
  0xae   : > { %v407_v28 = vpop.f32.mrf.mxu0 }
  0xaf   : > { %v408_v29 = vadd.f32 %v866_v19, %v407_v28  ;;  %v452_v2 = vmax.f32 %v431_v63, 0.0 }
  0xb1   : > { %v443_v31 = vmax.f32 %v408_v29, 0.0 }
  0xb3   : > { %v457_v32 = vpack.c.bf16 %v443_v31, %v442_v30 }
  0xb4   : > { %v432_v62 = vpop.f32.mrf.mxu2 }
  0xb5   : > { %545 = vmatmul.bf16.gmra.mxu1 %v457_v32  ;;  %v433_v0 = vadd.f32 %v866_v19, %v432_v62 }
  0xb6   : > { %v410_v33 = vpop.f32.mrf.mxu0 }
  0xb7   : > { %v411_v34 = vadd.f32 %v866_v19, %v410_v33  ;;  %v453_v3 = vmax.f32 %v433_v0, 0.0 }
  0xb9   : > { %v444_v37 = vmax.f32 %v411_v34, 0.0  ;;  %v462_v4 = vpack.c.bf16 %v453_v3, %v452_v2 }
  0xbc   : > { %v435_v1 = vpop.f32.mrf.mxu2 }
  0xbd   : > { %v436_v6 = vadd.f32 %v866_v19, %v435_v1 }
  0xbe   : > { %v412_v35 = vpop.f32.mrf.mxu0 }
  0xbf   : > { %v413_v36 = vadd.f32 %v866_v19, %v412_v35  ;;  %v454_v8 = vmax.f32 %v436_v6, 0.0 }
  0xc1   : > { %v445_v38 = vmax.f32 %v413_v36, 0.0 }
  0xc3   : > { %v458_v39 = vpack.c.bf16 %v445_v38, %v444_v37 }
  0xc4   : > { %v437_v5 = vpop.f32.mrf.mxu2 }
  0xc5   : > { %550 = vmatmul.bf16.gmra.mxu1 %v458_v39  ;;  %v438_v7 = vadd.f32 %v866_v19, %v437_v5 }
  0xc6   : > { %v415_v40 = vpop.f32.mrf.mxu0 }
  0xc7   : > { %v416_v41 = vadd.f32 %v866_v19, %v415_v40  ;;  %v455_v9 = vmax.f32 %v438_v7, 0.0 }
  0xc9   : > { %v446_v44 = vmax.f32 %v416_v41, 0.0  ;;  %v463_v10 = vpack.c.bf16 %v455_v9, %v454_v8 }
  0xce   : > { %v417_v42 = vpop.f32.mrf.mxu0 }
  0xcf   : > { %v418_v43 = vadd.f32 %v866_v19, %v417_v42 }
  0xd1   : > { %v447_v45 = vmax.f32 %v418_v43, 0.0 }
  0xd3   : > { %v459_v46 = vpack.c.bf16 %v447_v45, %v446_v44  ;;  %v582_v44 = vld [vmem:[%s293_s14] sm:$0xff]  ;;  %s888_s14 = scalar_lea.hbm %s1131_s6, 16 }
  0xd4   : > { %p890_p3 = scmp.lt.s32.totalorder %s888_s14, %s884_s12 }
  0xd5   : > { %555 = vmatmul.bf16.gmra.mxu1 %v459_v46 }
  0xd6   : > { %v420_v47 = vpop.f32.mrf.mxu0  ;;  %p891_p5 = por %p890_p3, %p889_p2 }
  0xd7   : > { %v421_v49 = vadd.f32 %v866_v19, %v420_v47 }
  0xd8   : > { %p892_p6 = pnand %p891_p5, %p887_p1 }
  0xd9   : > { %v448_v53 = vmax.f32 %v421_v49, 0.0 }
  0xde   : > { %v422_v50 = vpop.f32.mrf.mxu0 }
  0xdf   : > { %v423_v51 = vadd.f32 %v866_v19, %v422_v50  ;;  %v867_v19 = vld [vmem:[%s1129_s4] ss:$0 sm:$0xff] }
  0xe1   : > { %v449_v54 = vmax.f32 %v423_v51, 0.0 }
  0xe3   : > { %v460_v55 = vpack.c.bf16 %v449_v54, %v448_v53 }
  0xe5   : > { %560 = vmatmul.bf16.vlgmr.msra.gmra.mxu3 %v460_v55 }
  0xf5   : > { %565 = vmatmul.bf16.gmra.mxu3 %v461_v61 }
 0x105   : > { %570 = vmatmul.bf16.gmra.mxu3 %v462_v4 }
 0x115   : > { %575 = vmatmul.bf16.gmra.mxu3 %v463_v10 }
 0x122   : > { %v541_v11 = vpop.f32.mrf.mxu1 }
 0x123   : > { %v542_v43 = vadd.f32 %v867_v19, %v541_v11 }
 0x12a   : > { %v543_v14 = vpop.f32.mrf.mxu1 }
 0x12b   : > { %v544_v42 = vadd.f32 %v867_v19, %v543_v14 }
 0x132   : > { %v546_v16 = vpop.f32.mrf.mxu1 }
 0x133   : > { %v547_v41 = vadd.f32 %v867_v19, %v546_v16 }
 0x13a   : > { %v548_v18 = vpop.f32.mrf.mxu1 }
 0x13b   : > { %v549_v40 = vadd.f32 %v867_v19, %v548_v18 }
 0x142   : > { %v551_v21 = vpop.f32.mrf.mxu1 }
 0x143   : > { %v552_v39 = vadd.f32 %v867_v19, %v551_v21 }
 0x14a   : > { %v553_v24 = vpop.f32.mrf.mxu1 }
 0x14b   : > { %v554_v38 = vadd.f32 %v867_v19, %v553_v24 }
 0x152   : > { %v556_v28 = vpop.f32.mrf.mxu1 }
 0x153   : > { %v557_v37 = vadd.f32 %v867_v19, %v556_v28 }
 0x15a   : > { %v558_v34 = vpop.f32.mrf.mxu1 }
 0x15b   : > { %v559_v36 = vadd.f32 %v867_v19, %v558_v34 }
 0x168   : > { %v561_v12 = vpop.f32.mrf.mxu3 }
 0x169   : > { %v562_v35 = vadd.f32 %v867_v19, %v561_v12 }
 0x170   : > { %v563_v13 = vpop.f32.mrf.mxu3 }
 0x171   : > { %v564_v33 = vadd.f32 %v867_v19, %v563_v13 }
 0x178   : > { %v566_v15 = vpop.f32.mrf.mxu3 }
 0x179   : > { %v567_v32 = vadd.f32 %v867_v19, %v566_v15 }
 0x180   : > { %v568_v17 = vpop.f32.mrf.mxu3 }
 0x181   : > { %v569_v31 = vadd.f32 %v867_v19, %v568_v17 }
 0x188   : > { %v571_v20 = vpop.f32.mrf.mxu3 }
 0x189   : > { %v572_v30 = vadd.f32 %v867_v19, %v571_v20 }
 0x190   : > { %v573_v22 = vpop.f32.mrf.mxu3 }
 0x191   : > { %v574_v29 = vadd.f32 %v867_v19, %v573_v22 }
 0x198   : > { %v576_v23 = vpop.f32.mrf.mxu3 }
 0x199   : > { %v577_v27 = vadd.f32 %v867_v19, %v576_v23 }
 0x1a0   : > { %v578_v25 = vpop.f32.mrf.mxu3 }
 0x1a1   : > { %v579_v26 = vadd.f32 %v867_v19, %v578_v25 }
 0x1a3   : > { %583 = vmatpush.msrb.mxu2 %v579_v26 }
 0x1a5   : > { %584 = vmatpush.msrb.mxu2 %v577_v27 }
 0x1a7   : > { %585 = vmatpush.msrb.mxu2 %v574_v29 }
 0x1a9   : > { %586 = vmatpush.msrb.mxu2 %v572_v30 }
 0x1ab   : > { %587 = vmatpush.msrb.mxu2 %v569_v31 }
 0x1ad   : > { %588 = vmatpush.msrb.mxu2 %v567_v32 }
 0x1af   : > { %589 = vmatpush.msrb.mxu2 %v564_v33 }
 0x1b1   : > { %590 = vmatpush.msrb.mxu2 %v562_v35 }
 0x1b3   : > { %591 = vmatpush.msrb.mxu2 %v559_v36 }
 0x1b5   : > { %592 = vmatpush.msrb.mxu2 %v557_v37 }
 0x1b7   : > { %593 = vmatpush.msrb.mxu2 %v554_v38 }
 0x1b9   : > { %594 = vmatpush.msrb.mxu2 %v552_v39 }
 0x1bb   : > { %595 = vmatpush.msrb.mxu2 %v549_v40 }
 0x1bd   : > { %596 = vmatpush.msrb.mxu2 %v547_v41 }
 0x1bf   : > { %597 = vmatpush.msrb.mxu2 %v544_v42 }
 0x1c1   : > { %598 = vmatpush.msrb.mxu2 %v542_v43 }
 0x1c2   : > { %599 = vmatmul.f32.vlgmr.msrb.gmra.mxu2 %v582_v44 }
 0x245   : > { %v600_v45 = vpop.f32.mrf.mxu2 }
 0x246   : > { %604 = vst [vmem:[%s280_s27] sm:$0xff] %v600_v45 }
 0x247   : > { %895 = shalt.err (!%p892_p6)
}
 0x248   : > { %810 = dma.vmem_to_hbm [thread:$0]  (%p1023_p4), %s619_s28, 128, %s621_s30, %s606_s8  }
 0x249 PF: > { %p816_p7 = scmp.ge.s32.totalorder %s946_s26, 2  ;;  %s632_s15 = sand.u32 1, %s926_s21  }
 0x24a   : > { %s633_s17 = scalar_lea.sflag [#allocation3], %s632_s15 }
 0x24b   : > { %p813_p9 = pnand %p816_p7, %p1030_p8 }
 0x24d   : > { %p814_p10 = pneg %p813_p9 }
 0x24f   : > { %921 = dma.done.wait (%p814_p10), %s633_s17, 128  }
 0x250   : > { %923 = vsyncadd (%p814_p10), %s633_s17, 4294967168  ;;  %s19_s26 = sadd.s32 1, %s946_s26   ;;  %s1134_s21 = smov %s930_s22 }
 0x251   : > { %p16_p11 = scmp.ge.s32.totalorder %s19_s26, 4   ;;  %s1135_s22 = smov %s934_s23 }
 0x252   : > { %s1136_s23 = smov %s1036_s10  ;;  %s1137_s24 = smov %s942_s25 }
 0x253   : > { %s1138_s25 = smov %s1140_s29  ;;  %18 = sbr.rel (!%p16_p11) target bundleno = 4 (0x4), region = 86 }
 0x258   :  { %639 = vsyncpa [#allocation3], 1 }
 0x259   :  { %641 = vsyncpa [#allocation3 + $0x1], 1 }

</bundles_post_ra>
